<compile_context>
chip_gen: v7x
topology: tpu7x:2x2x1
jax: 0.10.0
libtpu: 0.0.40
codegen_flags: <defaults>
</compile_context>

<pallas_src>
import functools

import jax
import jax.numpy as jnp
from jax.experimental import pallas as pl
from jax.experimental.pallas import tpu as pltpu

_PAD = 8  # sublane-aligned top padding for the out1 staging scratch


def _leaky(v, slope):
    return jnp.where(v >= 0, v, slope * v)


def make_fused_kernel(H, W, Cin, Cout, Ho, Wo, slope, with_down):
    WCo = W * Cout
    WoCo = Wo * Cout

    def kernel(xp_ref, a1_ref, b1_ref, a2_ref, b2_ref,
               wid_ref, bid_ref, wm_ref, bm_ref, *rest):
        if with_down:
            r_ref, d_ref, down_ref, merge_ref, o1p_ref = rest
        else:
            merge_ref, o1p_ref = rest
        f32 = jnp.float32

        # ---- conv_1: 3x3, pad 1, bias, LeakyReLU ----
        # One (H, W*Cin) x (W*Cin, W*Cout) matmul per kh tap; kw taps and the
        # W-direction zero padding are already folded into a1[kh].
        acc1 = jnp.zeros((H, WCo), f32)
        for kh in range(3):
            rows = xp_ref[0, pl.ds(kh, H), :]                      # (H, W*Cin)
            acc1 = acc1 + jnp.dot(rows, a1_ref[kh],
                                  preferred_element_type=f32)
        out1 = _leaky(acc1 + b1_ref[...], slope)                   # (H, W*Cout)

        # ---- stage out1 into a zero-padded VMEM scratch (aligned stores) ----
        zpad = jnp.zeros((_PAD, WCo), f32)
        o1p_ref[pl.ds(0, _PAD), :] = zpad                          # top pad rows
        o1p_ref[pl.ds(_PAD, H), :] = out1                          # data rows
        o1p_ref[pl.ds(_PAD + H, _PAD), :] = zpad                   # bottom pad rows

        # ---- conv_2: 3x3, pad 1, bias, LeakyReLU ----
        # kh-shifted views of out1 come straight out of the padded scratch via
        # static row-window reads (no selection matmuls, no extra HBM input).
        acc2 = jnp.zeros((H, WCo), f32)
        for kh in range(3):
            shifted = o1p_ref[pl.ds(_PAD - 1 + kh, H), :]          # (H, W*Cout)
            acc2 = acc2 + jnp.dot(shifted, a2_ref[kh],
                                  preferred_element_type=f32)
        out2 = _leaky(acc2 + b2_ref[...], slope)

        # ---- identity 1x1 conv (block-diagonal weight) + residual ----
        x_c = xp_ref[0, pl.ds(1, H), :]                            # (H, W*Cin)
        idn = jnp.dot(x_c, wid_ref[...], preferred_element_type=f32) + bid_ref[...]
        res = out2 + idn                                           # (H, W*Cout)

        # ---- conv_before_merge 1x1 (merge_before_downsample=True path) ----
        merged = jnp.dot(res, wm_ref[...], preferred_element_type=f32) + bm_ref[...]
        merge_ref[0] = merged.astype(merge_ref.dtype)

        if with_down:
            # ---- conv_down: 4x4, stride 2, pad 1, no bias (fused) ----
            down = jnp.zeros((Ho, WoCo), f32)
            for kh in range(4):
                sel = jnp.dot(r_ref[kh], res, preferred_element_type=f32)  # (Ho, W*Cout)
                down = down + jnp.dot(sel, d_ref[kh],
                                      preferred_element_type=f32)
            down_ref[0] = down.astype(down_ref.dtype)

    return kernel


# ---------------- host-side weight packing (tiny, one-off) ----------------

def _pack_conv3(w, W, Cin, Cout):
    """(3,3,Cin,Cout) -> (3, W*Cin, W*Cout); A[kh] implements all kw taps
    (incl. zero padding in W) when applied to a flattened (W*Cin) row."""
    mats = []
    for kh in range(3):
        m = jnp.zeros((W * Cin, W * Cout), jnp.float32)
        for kw in range(3):
            sel = jnp.eye(W, k=1 - kw, dtype=jnp.float32)          # wi == wo + kw - 1
            m = m + jnp.kron(sel, w[kh, kw].astype(jnp.float32))
        mats.append(m)
    return jnp.stack(mats)


def _pack_1x1(w, W):
    """(Cin,Cout) 1x1 conv -> block-diagonal (W*Cin, W*Cout)."""
    return jnp.kron(jnp.eye(W, dtype=jnp.float32), w.astype(jnp.float32))


def _pack_down(wd, H, W, Ho, Wo, C):
    """4x4 stride-2 pad-1 conv -> left selectors R:(4,Ho,H), right mats D:(4,W*C,Wo*C)."""
    wi = jnp.arange(W)[:, None]
    ow = jnp.arange(Wo)[None, :]
    oh = jnp.arange(Ho)[:, None]
    r_in = jnp.arange(H)[None, :]
    rmats, dmats = [], []
    for kh in range(4):
        d = jnp.zeros((W * C, Wo * C), jnp.float32)
        for kw in range(4):
            sel = (wi == 2 * ow + kw - 1).astype(jnp.float32)       # (W, Wo)
            d = d + jnp.kron(sel, wd[kh, kw].astype(jnp.float32))
        dmats.append(d)
        rmats.append((r_in == 2 * oh + kh - 1).astype(jnp.float32))  # (Ho, H)
    return jnp.stack(rmats), jnp.stack(dmats)


def _tile_bias(b, W):
    return jnp.tile(b.reshape(1, -1).astype(jnp.float32), (1, W))


# ------------------------------- wrapper -----------------------------------

def unet_ev_conv_block(x_nchw, params, relu_slope, downsample=True,
                       merge_before_downsample=True):
    """Matches UNetEVConvBlock.forward (use_emgc=False). Inputs/outputs NCHW."""
    if not merge_before_downsample:
        # TODO(synk): merge_before_downsample=False branch (conv_before_merge on
        # the downsampled output) is not exercised; default True branch only.
        raise NotImplementedError("merge_before_downsample=False not implemented")

    x = jnp.transpose(x_nchw, (0, 2, 3, 1)).astype(jnp.float32)    # NHWC
    B, H, W, Cin = x.shape
    Cout = params['w1'].shape[-1]
    WCi, WCo = W * Cin, W * Cout
    Ho, Wo = H // 2, W // 2
    WoCo = Wo * Cout

    # Lane-dense activation layout, zero-padded by one row in H.
    xp = jnp.pad(x.reshape(B, H, WCi), ((0, 0), (1, 1), (0, 0)))

    a1 = _pack_conv3(params['w1'], W, Cin, Cout)
    a2 = _pack_conv3(params['w2'], W, Cout, Cout)
    widb = _pack_1x1(params['wid'], W)
    wmb = _pack_1x1(params['wm'], W)
    b1 = _tile_bias(params['b1'], W)
    b2 = _tile_bias(params['b2'], W)
    bid = _tile_bias(params['bid'], W)
    bm = _tile_bias(params['bm'], W)

    def full(shape):
        return pl.BlockSpec(shape, lambda b, _s=shape: (0,) * len(_s))

    in_specs = [
        pl.BlockSpec((1, H + 2, WCi), lambda b: (b, 0, 0)),
        full((3, WCi, WCo)), full((1, WCo)),
        full((3, WCo, WCo)), full((1, WCo)),
        full((WCi, WCo)), full((1, WCo)),
        full((WCo, WCo)), full((1, WCo)),
    ]
    args = [xp, a1, b1, a2, b2, widb, bid, wmb, bm]

    out_shapes, out_specs = [], []
    if downsample:
        R, D = _pack_down(params['wd'], H, W, Ho, Wo, Cout)
        in_specs += [full((4, Ho, H)), full((4, WCo, WoCo))]
        args += [R, D]
        out_shapes.append(jax.ShapeDtypeStruct((B, Ho, WoCo), jnp.float32))
        out_specs.append(pl.BlockSpec((1, Ho, WoCo), lambda b: (b, 0, 0)))
    out_shapes.append(jax.ShapeDtypeStruct((B, H, WCo), jnp.float32))
    out_specs.append(pl.BlockSpec((1, H, WCo), lambda b: (b, 0, 0)))

    kernel = make_fused_kernel(H, W, Cin, Cout, Ho, Wo, relu_slope, downsample)

    outs = pl.pallas_call(
        kernel,
        out_shape=tuple(out_shapes),
        grid_spec=pltpu.PrefetchScalarGridSpec(
            num_scalar_prefetch=0,
            grid=(B,),
            in_specs=in_specs,
            out_specs=tuple(out_specs),
            scratch_shapes=[pltpu.VMEM((H + 2 * _PAD, WCo), jnp.float32)],
        ),
        compiler_params=pltpu.CompilerParams(
            dimension_semantics=("parallel",)),
    )(*args)

    if downsample:
        out_down_f, out_merge_f = outs
        out_down = out_down_f.reshape(B, Ho, Wo, Cout).transpose(0, 3, 1, 2)
        out_merge = out_merge_f.reshape(B, H, W, Cout).transpose(0, 3, 1, 2)
        return out_down, out_merge
    out_merge_f = outs[0] if isinstance(outs, (tuple, list)) else outs
    return out_merge_f.reshape(B, H, W, Cout).transpose(0, 3, 1, 2)


# ----------------------------- reference -----------------------------------

def _reference_forward(x_nchw, params, slope):
    """Pure-JAX/XLA reference of the same forward, for a correctness check."""
    x = jnp.transpose(x_nchw, (0, 2, 3, 1)).astype(jnp.float32)

    def conv(v, w, b, stride=1, pad=1):
        y = jax.lax.conv_general_dilated(
            v, w, (stride, stride), [(pad, pad), (pad, pad)],
            dimension_numbers=('NHWC', 'HWIO', 'NHWC'),
            precision=jax.lax.Precision.HIGHEST)
        if b is not None:
            y = y + b.reshape(1, 1, 1, -1)
        return y

    lrelu = lambda v: jnp.where(v >= 0, v, slope * v)
    o1 = lrelu(conv(x, params['w1'], params['b1']))
    o2 = lrelu(conv(o1, params['w2'], params['b2']))
    idn = conv(x, params['wid'][None, None], params['bid'], pad=0)
    out = o2 + idn
    out_down = conv(out, params['wd'], None, stride=2, pad=1)
    merged = conv(out, params['wm'][None, None], params['bm'], pad=0)
    return (jnp.transpose(out_down, (0, 3, 1, 2)),
            jnp.transpose(merged, (0, 3, 1, 2)))


if __name__ == "__main__":
    B, Cin, Cout, H, W = 2, 4, 8, 16, 16
    relu_slope = 0.2

    key = jax.random.PRNGKey(0)
    ks = jax.random.split(key, 11)
    x_nchw = jax.random.normal(ks[0], (B, Cin, H, W), jnp.float32)

    params = {
        'w1':  0.1 * jax.random.normal(ks[1], (3, 3, Cin, Cout), jnp.float32),
        'b1':  0.1 * jax.random.normal(ks[2], (1, Cout), jnp.float32),
        'w2':  0.1 * jax.random.normal(ks[3], (3, 3, Cout, Cout), jnp.float32),
        'b2':  0.1 * jax.random.normal(ks[4], (1, Cout), jnp.float32),
        'wid': 0.1 * jax.random.normal(ks[5], (Cin, Cout), jnp.float32),
        'bid': 0.1 * jax.random.normal(ks[6], (1, Cout), jnp.float32),
        'wm':  0.1 * jax.random.normal(ks[7], (Cout, Cout), jnp.float32),
        'bm':  0.1 * jax.random.normal(ks[8], (1, Cout), jnp.float32),
        'wd':  0.1 * jax.random.normal(ks[9], (4, 4, Cout, Cout), jnp.float32),
    }

    fwd = jax.jit(functools.partial(unet_ev_conv_block, relu_slope=relu_slope,
                                    downsample=True, merge_before_downsample=True))
    out_down, out_merge = fwd(x_nchw, params)
    jax.block_until_ready((out_down, out_merge))

    ref_down, ref_merge = _reference_forward(x_nchw, params, relu_slope)
    assert out_down.shape == (B, Cout, H // 2, W // 2)
    assert out_merge.shape == (B, Cout, H, W)
    assert jnp.allclose(out_down, ref_down, atol=2e-3, rtol=2e-3)
    assert jnp.allclose(out_merge, ref_merge, atol=2e-3, rtol=2e-3)

    print("KERNEL_OK")
</pallas_src>

<mosaic_0001>
module attributes {stable_mosaic.version = 11 : i64} {
  func.func @kernel(%arg0: i32, %arg1: memref<1x18x64xf32, #tpu.memory_space<vmem>>, %arg2: memref<3x64x128xf32, #tpu.memory_space<vmem>>, %arg3: memref<1x128xf32, #tpu.memory_space<vmem>>, %arg4: memref<3x128x128xf32, #tpu.memory_space<vmem>>, %arg5: memref<1x128xf32, #tpu.memory_space<vmem>>, %arg6: memref<64x128xf32, #tpu.memory_space<vmem>>, %arg7: memref<1x128xf32, #tpu.memory_space<vmem>>, %arg8: memref<128x128xf32, #tpu.memory_space<vmem>>, %arg9: memref<1x128xf32, #tpu.memory_space<vmem>>, %arg10: memref<4x8x16xf32, #tpu.memory_space<vmem>>, %arg11: memref<4x128x64xf32, #tpu.memory_space<vmem>>, %arg12: memref<1x8x64xf32, #tpu.memory_space<vmem>>, %arg13: memref<1x16x128xf32, #tpu.memory_space<vmem>>, %arg14: memref<32x128xf32, #tpu.memory_space<vmem>>) attributes {dimension_semantics = [#tpu.dimension_semantics<parallel>], iteration_bounds = array<i64: 2>, scalar_prefetch = 0 : i64, scratch_operands = 1 : i64, tpu.core_type = #tpu.core_type<tc>, window_params = [{transform_indices = @transform_0, window_bounds = array<i64: 1, 18, 64>}, {pipeline_mode = #tpu.pipeline_mode<synchronous>, transform_indices = @transform_1, window_bounds = array<i64: 3, 64, 128>}, {pipeline_mode = #tpu.pipeline_mode<synchronous>, transform_indices = @transform_2, window_bounds = array<i64: 1, 128>}, {pipeline_mode = #tpu.pipeline_mode<synchronous>, transform_indices = @transform_3, window_bounds = array<i64: 3, 128, 128>}, {pipeline_mode = #tpu.pipeline_mode<synchronous>, transform_indices = @transform_4, window_bounds = array<i64: 1, 128>}, {pipeline_mode = #tpu.pipeline_mode<synchronous>, transform_indices = @transform_5, window_bounds = array<i64: 64, 128>}, {pipeline_mode = #tpu.pipeline_mode<synchronous>, transform_indices = @transform_6, window_bounds = array<i64: 1, 128>}, {pipeline_mode = #tpu.pipeline_mode<synchronous>, transform_indices = @transform_7, window_bounds = array<i64: 128, 128>}, {pipeline_mode = #tpu.pipeline_mode<synchronous>, transform_indices = @transform_8, window_bounds = array<i64: 1, 128>}, {pipeline_mode = #tpu.pipeline_mode<synchronous>, transform_indices = @transform_9, window_bounds = array<i64: 4, 8, 16>}, {pipeline_mode = #tpu.pipeline_mode<synchronous>, transform_indices = @transform_10, window_bounds = array<i64: 4, 128, 64>}, {transform_indices = @transform_11, window_bounds = array<i64: 1, 8, 64>}, {transform_indices = @transform_12, window_bounds = array<i64: 1, 16, 128>}]} {
    %cst = arith.constant 0.000000e+00 : f32
    %0 = vector.broadcast %cst : f32 to vector<16x128xf32>
    %c0 = arith.constant 0 : index
    %c0_0 = arith.constant 0 : index
    %c0_1 = arith.constant 0 : index
    %1 = vector.load %arg1[%c0, %c0_0, %c0_1] : memref<1x18x64xf32, #tpu.memory_space<vmem>>, vector<1x16x64xf32>
    %2 = vector.shape_cast %1 : vector<1x16x64xf32> to vector<16x64xf32>
    %c0_2 = arith.constant 0 : index
    %c0_3 = arith.constant 0 : index
    %c0_4 = arith.constant 0 : index
    %3 = vector.load %arg2[%c0_2, %c0_3, %c0_4] : memref<3x64x128xf32, #tpu.memory_space<vmem>>, vector<1x64x128xf32>
    %4 = vector.shape_cast %3 : vector<1x64x128xf32> to vector<64x128xf32>
    %cst_5 = arith.constant dense<0.000000e+00> : vector<16x128xf32>
    %5 = tpu.matmul %2, %4, %cst_5 {dimension_numbers = #tpu.dot_dimension_numbers<[1], [0], [0], [1], [0, 0, 1, 1], [], []>} : vector<16x64xf32>, vector<64x128xf32>, vector<16x128xf32> -> vector<16x128xf32>
    %6 = arith.addf %0, %5 : vector<16x128xf32>
    %c0_6 = arith.constant 0 : index
    %c1 = arith.constant 1 : index
    %c0_7 = arith.constant 0 : index
    %7 = vector.load %arg1[%c0_6, %c1, %c0_7] : memref<1x18x64xf32, #tpu.memory_space<vmem>>, vector<1x16x64xf32>
    %8 = vector.shape_cast %7 : vector<1x16x64xf32> to vector<16x64xf32>
    %c1_8 = arith.constant 1 : index
    %c0_9 = arith.constant 0 : index
    %c0_10 = arith.constant 0 : index
    %9 = vector.load %arg2[%c1_8, %c0_9, %c0_10] : memref<3x64x128xf32, #tpu.memory_space<vmem>>, vector<1x64x128xf32>
    %10 = vector.shape_cast %9 : vector<1x64x128xf32> to vector<64x128xf32>
    %cst_11 = arith.constant dense<0.000000e+00> : vector<16x128xf32>
    %11 = tpu.matmul %8, %10, %cst_11 {dimension_numbers = #tpu.dot_dimension_numbers<[1], [0], [0], [1], [0, 0, 1, 1], [], []>} : vector<16x64xf32>, vector<64x128xf32>, vector<16x128xf32> -> vector<16x128xf32>
    %12 = arith.addf %6, %11 : vector<16x128xf32>
    %c0_12 = arith.constant 0 : index
    %c2 = arith.constant 2 : index
    %c0_13 = arith.constant 0 : index
    %13 = vector.load %arg1[%c0_12, %c2, %c0_13] : memref<1x18x64xf32, #tpu.memory_space<vmem>>, vector<1x16x64xf32>
    %14 = vector.shape_cast %13 : vector<1x16x64xf32> to vector<16x64xf32>
    %c2_14 = arith.constant 2 : index
    %c0_15 = arith.constant 0 : index
    %c0_16 = arith.constant 0 : index
    %15 = vector.load %arg2[%c2_14, %c0_15, %c0_16] : memref<3x64x128xf32, #tpu.memory_space<vmem>>, vector<1x64x128xf32>
    %16 = vector.shape_cast %15 : vector<1x64x128xf32> to vector<64x128xf32>
    %cst_17 = arith.constant dense<0.000000e+00> : vector<16x128xf32>
    %17 = tpu.matmul %14, %16, %cst_17 {dimension_numbers = #tpu.dot_dimension_numbers<[1], [0], [0], [1], [0, 0, 1, 1], [], []>} : vector<16x64xf32>, vector<64x128xf32>, vector<16x128xf32> -> vector<16x128xf32>
    %18 = arith.addf %12, %17 : vector<16x128xf32>
    %c0_18 = arith.constant 0 : index
    %c0_19 = arith.constant 0 : index
    %19 = vector.load %arg3[%c0_18, %c0_19] : memref<1x128xf32, #tpu.memory_space<vmem>>, vector<1x128xf32>
    %20 = vector.broadcast %19 : vector<1x128xf32> to vector<16x128xf32>
    %21 = arith.addf %18, %20 : vector<16x128xf32>
    %cst_20 = arith.constant 0.000000e+00 : f32
    %22 = vector.broadcast %cst_20 : f32 to vector<16x128xf32>
    %23 = arith.cmpf oge, %21, %22 : vector<16x128xf32>
    %cst_21 = arith.constant 2.000000e-01 : f32
    %24 = vector.broadcast %cst_21 : f32 to vector<16x128xf32>
    %25 = arith.mulf %24, %21 : vector<16x128xf32>
    %26 = arith.select %23, %21, %25 : vector<16x128xi1>, vector<16x128xf32>
    %cst_22 = arith.constant 0.000000e+00 : f32
    %27 = vector.broadcast %cst_22 : f32 to vector<8x128xf32>
    %c0_23 = arith.constant 0 : index
    %c0_24 = arith.constant 0 : index
    %28 = vector.load %arg14[%c0_23, %c0_24] : memref<32x128xf32, #tpu.memory_space<vmem>>, vector<8x128xf32>
    tpu.vector_store %arg14[%c0_23, %c0_24], %27 {strides = array<i32>} : memref<32x128xf32, #tpu.memory_space<vmem>>, vector<8x128xf32>,
    %c8 = arith.constant 8 : index
    %c0_25 = arith.constant 0 : index
    %29 = vector.load %arg14[%c8, %c0_25] : memref<32x128xf32, #tpu.memory_space<vmem>>, vector<16x128xf32>
    tpu.vector_store %arg14[%c8, %c0_25], %26 {strides = array<i32>} : memref<32x128xf32, #tpu.memory_space<vmem>>, vector<16x128xf32>,
    %c24 = arith.constant 24 : index
    %c0_26 = arith.constant 0 : index
    %30 = vector.load %arg14[%c24, %c0_26] : memref<32x128xf32, #tpu.memory_space<vmem>>, vector<8x128xf32>
    tpu.vector_store %arg14[%c24, %c0_26], %27 {strides = array<i32>} : memref<32x128xf32, #tpu.memory_space<vmem>>, vector<8x128xf32>,
    %cst_27 = arith.constant 0.000000e+00 : f32
    %31 = vector.broadcast %cst_27 : f32 to vector<16x128xf32>
    %c7 = arith.constant 7 : index
    %c0_28 = arith.constant 0 : index
    %32 = vector.load %arg14[%c7, %c0_28] : memref<32x128xf32, #tpu.memory_space<vmem>>, vector<16x128xf32>
    %c0_29 = arith.constant 0 : index
    %c0_30 = arith.constant 0 : index
    %c0_31 = arith.constant 0 : index
    %33 = vector.load %arg4[%c0_29, %c0_30, %c0_31] : memref<3x128x128xf32, #tpu.memory_space<vmem>>, vector<1x128x128xf32>
    %34 = vector.shape_cast %33 : vector<1x128x128xf32> to vector<128x128xf32>
    %cst_32 = arith.constant dense<0.000000e+00> : vector<16x128xf32>
    %35 = tpu.matmul %32, %34, %cst_32 {dimension_numbers = #tpu.dot_dimension_numbers<[1], [0], [0], [1], [0, 0, 1, 1], [], []>} : vector<16x128xf32>, vector<128x128xf32>, vector<16x128xf32> -> vector<16x128xf32>
    %36 = arith.addf %31, %35 : vector<16x128xf32>
    %c8_33 = arith.constant 8 : index
    %c0_34 = arith.constant 0 : index
    %37 = vector.load %arg14[%c8_33, %c0_34] : memref<32x128xf32, #tpu.memory_space<vmem>>, vector<16x128xf32>
    %c1_35 = arith.constant 1 : index
    %c0_36 = arith.constant 0 : index
    %c0_37 = arith.constant 0 : index
    %38 = vector.load %arg4[%c1_35, %c0_36, %c0_37] : memref<3x128x128xf32, #tpu.memory_space<vmem>>, vector<1x128x128xf32>
    %39 = vector.shape_cast %38 : vector<1x128x128xf32> to vector<128x128xf32>
    %cst_38 = arith.constant dense<0.000000e+00> : vector<16x128xf32>
    %40 = tpu.matmul %37, %39, %cst_38 {dimension_numbers = #tpu.dot_dimension_numbers<[1], [0], [0], [1], [0, 0, 1, 1], [], []>} : vector<16x128xf32>, vector<128x128xf32>, vector<16x128xf32> -> vector<16x128xf32>
    %41 = arith.addf %36, %40 : vector<16x128xf32>
    %c9 = arith.constant 9 : index
    %c0_39 = arith.constant 0 : index
    %42 = vector.load %arg14[%c9, %c0_39] : memref<32x128xf32, #tpu.memory_space<vmem>>, vector<16x128xf32>
    %c2_40 = arith.constant 2 : index
    %c0_41 = arith.constant 0 : index
    %c0_42 = arith.constant 0 : index
    %43 = vector.load %arg4[%c2_40, %c0_41, %c0_42] : memref<3x128x128xf32, #tpu.memory_space<vmem>>, vector<1x128x128xf32>
    %44 = vector.shape_cast %43 : vector<1x128x128xf32> to vector<128x128xf32>
    %cst_43 = arith.constant dense<0.000000e+00> : vector<16x128xf32>
    %45 = tpu.matmul %42, %44, %cst_43 {dimension_numbers = #tpu.dot_dimension_numbers<[1], [0], [0], [1], [0, 0, 1, 1], [], []>} : vector<16x128xf32>, vector<128x128xf32>, vector<16x128xf32> -> vector<16x128xf32>
    %46 = arith.addf %41, %45 : vector<16x128xf32>
    %c0_44 = arith.constant 0 : index
    %c0_45 = arith.constant 0 : index
    %47 = vector.load %arg5[%c0_44, %c0_45] : memref<1x128xf32, #tpu.memory_space<vmem>>, vector<1x128xf32>
    %48 = vector.broadcast %47 : vector<1x128xf32> to vector<16x128xf32>
    %49 = arith.addf %46, %48 : vector<16x128xf32>
    %cst_46 = arith.constant 0.000000e+00 : f32
    %50 = vector.broadcast %cst_46 : f32 to vector<16x128xf32>
    %51 = arith.cmpf oge, %49, %50 : vector<16x128xf32>
    %cst_47 = arith.constant 2.000000e-01 : f32
    %52 = vector.broadcast %cst_47 : f32 to vector<16x128xf32>
    %53 = arith.mulf %52, %49 : vector<16x128xf32>
    %54 = arith.select %51, %49, %53 : vector<16x128xi1>, vector<16x128xf32>
    %c0_48 = arith.constant 0 : index
    %c1_49 = arith.constant 1 : index
    %c0_50 = arith.constant 0 : index
    %55 = vector.load %arg1[%c0_48, %c1_49, %c0_50] : memref<1x18x64xf32, #tpu.memory_space<vmem>>, vector<1x16x64xf32>
    %56 = vector.shape_cast %55 : vector<1x16x64xf32> to vector<16x64xf32>
    %c0_51 = arith.constant 0 : index
    %c0_52 = arith.constant 0 : index
    %57 = vector.load %arg6[%c0_51, %c0_52] : memref<64x128xf32, #tpu.memory_space<vmem>>, vector<64x128xf32>
    %cst_53 = arith.constant dense<0.000000e+00> : vector<16x128xf32>
    %58 = tpu.matmul %56, %57, %cst_53 {dimension_numbers = #tpu.dot_dimension_numbers<[1], [0], [0], [1], [0, 0, 1, 1], [], []>} : vector<16x64xf32>, vector<64x128xf32>, vector<16x128xf32> -> vector<16x128xf32>
    %c0_54 = arith.constant 0 : index
    %c0_55 = arith.constant 0 : index
    %59 = vector.load %arg7[%c0_54, %c0_55] : memref<1x128xf32, #tpu.memory_space<vmem>>, vector<1x128xf32>
    %60 = vector.broadcast %59 : vector<1x128xf32> to vector<16x128xf32>
    %61 = arith.addf %58, %60 : vector<16x128xf32>
    %62 = arith.addf %54, %61 : vector<16x128xf32>
    %c0_56 = arith.constant 0 : index
    %c0_57 = arith.constant 0 : index
    %63 = vector.load %arg8[%c0_56, %c0_57] : memref<128x128xf32, #tpu.memory_space<vmem>>, vector<128x128xf32>
    %cst_58 = arith.constant dense<0.000000e+00> : vector<16x128xf32>
    %64 = tpu.matmul %62, %63, %cst_58 {dimension_numbers = #tpu.dot_dimension_numbers<[1], [0], [0], [1], [0, 0, 1, 1], [], []>} : vector<16x128xf32>, vector<128x128xf32>, vector<16x128xf32> -> vector<16x128xf32>
    %c0_59 = arith.constant 0 : index
    %c0_60 = arith.constant 0 : index
    %65 = vector.load %arg9[%c0_59, %c0_60] : memref<1x128xf32, #tpu.memory_space<vmem>>, vector<1x128xf32>
    %66 = vector.broadcast %65 : vector<1x128xf32> to vector<16x128xf32>
    %67 = arith.addf %64, %66 : vector<16x128xf32>
    %c0_61 = arith.constant 0 : index
    %c0_62 = arith.constant 0 : index
    %c0_63 = arith.constant 0 : index
    %68 = vector.load %arg13[%c0_61, %c0_62, %c0_63] : memref<1x16x128xf32, #tpu.memory_space<vmem>>, vector<1x16x128xf32>
    %69 = vector.shape_cast %68 : vector<1x16x128xf32> to vector<16x128xf32>
    %70 = vector.shape_cast %67 : vector<16x128xf32> to vector<1x16x128xf32>
    tpu.vector_store %arg13[%c0_61, %c0_62, %c0_63], %70 {strides = array<i32>} : memref<1x16x128xf32, #tpu.memory_space<vmem>>, vector<1x16x128xf32>,
    %cst_64 = arith.constant 0.000000e+00 : f32
    %71 = vector.broadcast %cst_64 : f32 to vector<8x64xf32>
    %c0_65 = arith.constant 0 : index
    %c0_66 = arith.constant 0 : index
    %c0_67 = arith.constant 0 : index
    %72 = vector.load %arg10[%c0_65, %c0_66, %c0_67] : memref<4x8x16xf32, #tpu.memory_space<vmem>>, vector<1x8x16xf32>
    %73 = vector.shape_cast %72 : vector<1x8x16xf32> to vector<8x16xf32>
    %cst_68 = arith.constant dense<0.000000e+00> : vector<8x128xf32>
    %74 = tpu.matmul %73, %62, %cst_68 {dimension_numbers = #tpu.dot_dimension_numbers<[1], [0], [0], [1], [0, 0, 1, 1], [], []>} : vector<8x16xf32>, vector<16x128xf32>, vector<8x128xf32> -> vector<8x128xf32>
    %c0_69 = arith.constant 0 : index
    %c0_70 = arith.constant 0 : index
    %c0_71 = arith.constant 0 : index
    %75 = vector.load %arg11[%c0_69, %c0_70, %c0_71] : memref<4x128x64xf32, #tpu.memory_space<vmem>>, vector<1x128x64xf32>
    %76 = vector.shape_cast %75 : vector<1x128x64xf32> to vector<128x64xf32>
    %cst_72 = arith.constant dense<0.000000e+00> : vector<8x64xf32>
    %77 = tpu.matmul %74, %76, %cst_72 {dimension_numbers = #tpu.dot_dimension_numbers<[1], [0], [0], [1], [0, 0, 1, 1], [], []>} : vector<8x128xf32>, vector<128x64xf32>, vector<8x64xf32> -> vector<8x64xf32>
    %78 = arith.addf %71, %77 : vector<8x64xf32>
    %c1_73 = arith.constant 1 : index
    %c0_74 = arith.constant 0 : index
    %c0_75 = arith.constant 0 : index
    %79 = vector.load %arg10[%c1_73, %c0_74, %c0_75] : memref<4x8x16xf32, #tpu.memory_space<vmem>>, vector<1x8x16xf32>
    %80 = vector.shape_cast %79 : vector<1x8x16xf32> to vector<8x16xf32>
    %cst_76 = arith.constant dense<0.000000e+00> : vector<8x128xf32>
    %81 = tpu.matmul %80, %62, %cst_76 {dimension_numbers = #tpu.dot_dimension_numbers<[1], [0], [0], [1], [0, 0, 1, 1], [], []>} : vector<8x16xf32>, vector<16x128xf32>, vector<8x128xf32> -> vector<8x128xf32>
    %c1_77 = arith.constant 1 : index
    %c0_78 = arith.constant 0 : index
    %c0_79 = arith.constant 0 : index
    %82 = vector.load %arg11[%c1_77, %c0_78, %c0_79] : memref<4x128x64xf32, #tpu.memory_space<vmem>>, vector<1x128x64xf32>
    %83 = vector.shape_cast %82 : vector<1x128x64xf32> to vector<128x64xf32>
    %cst_80 = arith.constant dense<0.000000e+00> : vector<8x64xf32>
    %84 = tpu.matmul %81, %83, %cst_80 {dimension_numbers = #tpu.dot_dimension_numbers<[1], [0], [0], [1], [0, 0, 1, 1], [], []>} : vector<8x128xf32>, vector<128x64xf32>, vector<8x64xf32> -> vector<8x64xf32>
    %85 = arith.addf %78, %84 : vector<8x64xf32>
    %c2_81 = arith.constant 2 : index
    %c0_82 = arith.constant 0 : index
    %c0_83 = arith.constant 0 : index
    %86 = vector.load %arg10[%c2_81, %c0_82, %c0_83] : memref<4x8x16xf32, #tpu.memory_space<vmem>>, vector<1x8x16xf32>
    %87 = vector.shape_cast %86 : vector<1x8x16xf32> to vector<8x16xf32>
    %cst_84 = arith.constant dense<0.000000e+00> : vector<8x128xf32>
    %88 = tpu.matmul %87, %62, %cst_84 {dimension_numbers = #tpu.dot_dimension_numbers<[1], [0], [0], [1], [0, 0, 1, 1], [], []>} : vector<8x16xf32>, vector<16x128xf32>, vector<8x128xf32> -> vector<8x128xf32>
    %c2_85 = arith.constant 2 : index
    %c0_86 = arith.constant 0 : index
    %c0_87 = arith.constant 0 : index
    %89 = vector.load %arg11[%c2_85, %c0_86, %c0_87] : memref<4x128x64xf32, #tpu.memory_space<vmem>>, vector<1x128x64xf32>
    %90 = vector.shape_cast %89 : vector<1x128x64xf32> to vector<128x64xf32>
    %cst_88 = arith.constant dense<0.000000e+00> : vector<8x64xf32>
    %91 = tpu.matmul %88, %90, %cst_88 {dimension_numbers = #tpu.dot_dimension_numbers<[1], [0], [0], [1], [0, 0, 1, 1], [], []>} : vector<8x128xf32>, vector<128x64xf32>, vector<8x64xf32> -> vector<8x64xf32>
    %92 = arith.addf %85, %91 : vector<8x64xf32>
    %c3 = arith.constant 3 : index
    %c0_89 = arith.constant 0 : index
    %c0_90 = arith.constant 0 : index
    %93 = vector.load %arg10[%c3, %c0_89, %c0_90] : memref<4x8x16xf32, #tpu.memory_space<vmem>>, vector<1x8x16xf32>
    %94 = vector.shape_cast %93 : vector<1x8x16xf32> to vector<8x16xf32>
    %cst_91 = arith.constant dense<0.000000e+00> : vector<8x128xf32>
    %95 = tpu.matmul %94, %62, %cst_91 {dimension_numbers = #tpu.dot_dimension_numbers<[1], [0], [0], [1], [0, 0, 1, 1], [], []>} : vector<8x16xf32>, vector<16x128xf32>, vector<8x128xf32> -> vector<8x128xf32>
    %c3_92 = arith.constant 3 : index
    %c0_93 = arith.constant 0 : index
    %c0_94 = arith.constant 0 : index
    %96 = vector.load %arg11[%c3_92, %c0_93, %c0_94] : memref<4x128x64xf32, #tpu.memory_space<vmem>>, vector<1x128x64xf32>
    %97 = vector.shape_cast %96 : vector<1x128x64xf32> to vector<128x64xf32>
    %cst_95 = arith.constant dense<0.000000e+00> : vector<8x64xf32>
    %98 = tpu.matmul %95, %97, %cst_95 {dimension_numbers = #tpu.dot_dimension_numbers<[1], [0], [0], [1], [0, 0, 1, 1], [], []>} : vector<8x128xf32>, vector<128x64xf32>, vector<8x64xf32> -> vector<8x64xf32>
    %99 = arith.addf %92, %98 : vector<8x64xf32>
    %c0_96 = arith.constant 0 : index
    %c0_97 = arith.constant 0 : index
    %c0_98 = arith.constant 0 : index
    %100 = vector.load %arg12[%c0_96, %c0_97, %c0_98] : memref<1x8x64xf32, #tpu.memory_space<vmem>>, vector<1x8x64xf32>
    %101 = vector.shape_cast %100 : vector<1x8x64xf32> to vector<8x64xf32>
    %102 = vector.shape_cast %99 : vector<8x64xf32> to vector<1x8x64xf32>
    tpu.vector_store %arg12[%c0_96, %c0_97, %c0_98], %102 {strides = array<i32>} : memref<1x8x64xf32, #tpu.memory_space<vmem>>, vector<1x8x64xf32>,
    return
  }
  func.func @transform_0(%arg0: i32) -> (i32, i32, i32) {
    %c0_i32 = arith.constant 0 : i32
    %c0_i32_0 = arith.constant 0 : i32
    %c0_i32_1 = arith.constant 0 : i32
    return %arg0, %c0_i32, %c0_i32_0 : i32, i32, i32
  }
  func.func @transform_1(%arg0: i32) -> (i32, i32, i32) {
    %c0_i32 = arith.constant 0 : i32
    %c0_i32_0 = arith.constant 0 : i32
    %c0_i32_1 = arith.constant 0 : i32
    %c0_i32_2 = arith.constant 0 : i32
    return %c0_i32, %c0_i32_0, %c0_i32_1 : i32, i32, i32
  }
  func.func @transform_2(%arg0: i32) -> (i32, i32) {
    %c0_i32 = arith.constant 0 : i32
    %c0_i32_0 = arith.constant 0 : i32
    %c0_i32_1 = arith.constant 0 : i32
    return %c0_i32, %c0_i32_0 : i32, i32
  }
  func.func @transform_3(%arg0: i32) -> (i32, i32, i32) {
    %c0_i32 = arith.constant 0 : i32
    %c0_i32_0 = arith.constant 0 : i32
    %c0_i32_1 = arith.constant 0 : i32
    %c0_i32_2 = arith.constant 0 : i32
    return %c0_i32, %c0_i32_0, %c0_i32_1 : i32, i32, i32
  }
  func.func @transform_4(%arg0: i32) -> (i32, i32) {
    %c0_i32 = arith.constant 0 : i32
    %c0_i32_0 = arith.constant 0 : i32
    %c0_i32_1 = arith.constant 0 : i32
    return %c0_i32, %c0_i32_0 : i32, i32
  }
  func.func @transform_5(%arg0: i32) -> (i32, i32) {
    %c0_i32 = arith.constant 0 : i32
    %c0_i32_0 = arith.constant 0 : i32
    %c0_i32_1 = arith.constant 0 : i32
    return %c0_i32, %c0_i32_0 : i32, i32
  }
  func.func @transform_6(%arg0: i32) -> (i32, i32) {
    %c0_i32 = arith.constant 0 : i32
    %c0_i32_0 = arith.constant 0 : i32
    %c0_i32_1 = arith.constant 0 : i32
    return %c0_i32, %c0_i32_0 : i32, i32
  }
  func.func @transform_7(%arg0: i32) -> (i32, i32) {
    %c0_i32 = arith.constant 0 : i32
    %c0_i32_0 = arith.constant 0 : i32
    %c0_i32_1 = arith.constant 0 : i32
    return %c0_i32, %c0_i32_0 : i32, i32
  }
  func.func @transform_8(%arg0: i32) -> (i32, i32) {
    %c0_i32 = arith.constant 0 : i32
    %c0_i32_0 = arith.constant 0 : i32
    %c0_i32_1 = arith.constant 0 : i32
    return %c0_i32, %c0_i32_0 : i32, i32
  }
  func.func @transform_9(%arg0: i32) -> (i32, i32, i32) {
    %c0_i32 = arith.constant 0 : i32
    %c0_i32_0 = arith.constant 0 : i32
    %c0_i32_1 = arith.constant 0 : i32
    %c0_i32_2 = arith.constant 0 : i32
    return %c0_i32, %c0_i32_0, %c0_i32_1 : i32, i32, i32
  }
  func.func @transform_10(%arg0: i32) -> (i32, i32, i32) {
    %c0_i32 = arith.constant 0 : i32
    %c0_i32_0 = arith.constant 0 : i32
    %c0_i32_1 = arith.constant 0 : i32
    %c0_i32_2 = arith.constant 0 : i32
    return %c0_i32, %c0_i32_0, %c0_i32_1 : i32, i32, i32
  }
  func.func @transform_11(%arg0: i32) -> (i32, i32, i32) {
    %c0_i32 = arith.constant 0 : i32
    %c0_i32_0 = arith.constant 0 : i32
    %c0_i32_1 = arith.constant 0 : i32
    return %arg0, %c0_i32, %c0_i32_0 : i32, i32, i32
  }
  func.func @transform_12(%arg0: i32) -> (i32, i32, i32) {
    %c0_i32 = arith.constant 0 : i32
    %c0_i32_0 = arith.constant 0 : i32
    %c0_i32_1 = arith.constant 0 : i32
    return %arg0, %c0_i32, %c0_i32_0 : i32, i32, i32
  }
}

</mosaic_0001>

<bundles_post_ra>
// kernel: unet_ev_conv_block.1
= control target key start
LH: loop header
LB: loop body
LE: loop exit
PB: predicated region body
PF: predicated region fallthrough
CT: control target
= control target key end

     0   :  { %s3060_s21 = smov 0   ;;  %s3678_s0 = inlined_call_operand.vmem [shape: f32[2,18,64], index: 0, kind: input, shape index: {}]   ;;  %s3679_s1 = inlined_call_operand.vmem [shape: f32[3,64,128], index: 1, kind: input, shape index: {}]   ;;  %s3680_s2 = inlined_call_operand.vmem [shape: f32[1,128], index: 2, kind: input, shape index: {}]   ;;  %s3681_s3 = inlined_call_operand.vmem [shape: f32[3,128,128], index: 3, kind: input, shape index: {}]   ;;  %s3682_s4 = inlined_call_operand.vmem [shape: f32[1,128], index: 4, kind: input, shape index: {}]   ;;  %s3683_s5 = inlined_call_operand.vmem [shape: f32[64,128], index: 5, kind: input, shape index: {}]   ;;  %s3684_s6 = inlined_call_operand.vmem [shape: f32[1,128], index: 6, kind: input, shape index: {}]   ;;  %s3685_s7 = inlined_call_operand.vmem [shape: f32[128,128], index: 7, kind: input, shape index: {}]   ;;  %s3686_s8 = inlined_call_operand.vmem [shape: f32[1,128], index: 8, kind: input, shape index: {}]   ;;  %s3687_s9 = inlined_call_operand.vmem [shape: f32[4,8,16], index: 9, kind: input, shape index: {}]   ;;  %s3688_s10 = inlined_call_operand.vmem [shape: f32[4,128,64], index: 10, kind: input, shape index: {}]   ;;  %s3689_s11 = inlined_call_operand.vmem [shape: f32[2,8,64], index: 11, kind: output, shape index: {0}]   ;;  %s3690_s12 = inlined_call_operand.vmem [shape: f32[2,16,128], index: 12, kind: output, shape index: {1}]  }
   0x1 LB: > { %s1956_s22 = sadd.s32 4294967295, %s2990_s21   ;;  %p1960_p0 = scmp.ge.s32.totalorder %s2990_s21, 1  ;;  %s2990_s21 = sphi %s3060_s21, %s23_s21  }
   0x2   : > { %p365_p1 = scmp.lt.s32.totalorder %s2990_s21, 3 }
   0x4   : > { %p366_p2 = pnand %p1960_p0, %p365_p1 }
   0x5   : > { %v1965_v0 = vld [vmem:[%s3679_s1 + $0x40] sm:$0xff] (!%p366_p2)  ;;  %v1966_v1 = vld [vmem:[%s3679_s1 + $0x48] sm:$0xff] (!%p366_p2)  ;;  %v1967_v2 = vld [vmem:[%s3679_s1 + $0x50] sm:$0xff] (!%p366_p2)  ;;  %p411_p3 = scmp.lt.s32.totalorder (!%p366_p2), %s1956_s22, 1  ;;  %vm446_vm0 = vcmask (!%p366_p2), 523264   ;;  %vm2994_vm3 = vmmov (!%p366_p2), 0  }
   0x6   : > { %369 = sbr.rel (%p366_p2) target bundleno = 1243 (0x4db), region = 64  ;;  %v2659_v3 = vpack.c.bf16 (!%p366_p2), %v1966_v1, %v1965_v0  ;;  %v1968_v4 = vld [vmem:[%s3679_s1 + $0x58] sm:$0xff] (!%p366_p2)  ;;  %v1969_v6 = vld [vmem:[%s3679_s1 + $0x60] sm:$0xff] (!%p366_p2)  ;;  %v1970_v7 = vld [vmem:[%s3679_s1 + $0x68] sm:$0xff] (!%p366_p2)  ;;  %vm1221_vm6 = vcmask (!%p366_p2), 130048  }
   0x7   : > { %v2663_v5 = vpack.c.bf16 (!%p366_p2), %v1968_v4, %v1967_v2  ;;  %v2667_v8 = vpack.c.bf16 (!%p366_p2), %v1970_v7, %v1969_v6  ;;  %v1971_v9 = vld [vmem:[%s3679_s1 + $0x70] sm:$0xff] (!%p366_p2)  ;;  %v1972_v10 = vld [vmem:[%s3679_s1 + $0x78] sm:$0xff] (!%p366_p2)  ;;  %v427_v13 = vld [vmem:[%s3679_s1] sm:$0xff] (!%p366_p2) }
   0x8   : > { %2660 = vmatprep.subr.bf16.mxu0 (!%p366_p2), %v2659_v3  ;;  %v2671_v12 = vpack.c.bf16 (!%p366_p2), %v1972_v10, %v1971_v9  ;;  %v428_v14 = vld [vmem:[%s3679_s1 + $0x8] sm:$0xff] (!%p366_p2)  ;;  %v1988_v15 = vld [vmem:[%s3681_s3 + $0x80] sm:$0xff] (!%p366_p2)  ;;  %v1990_v17 = vld [vmem:[%s3681_s3 + $0x90] sm:$0xff] (!%p366_p2) }
   0x9   : > { %2662 = vmatpush3.bf16.msra.mxu0 (!%p366_p2), %v2659_v3  ;;  %v1989_v16 = vld [vmem:[%s3681_s3 + $0x88] sm:$0xff] (!%p366_p2)  ;;  %v1991_v19 = vld [vmem:[%s3681_s3 + $0x98] sm:$0xff] (!%p366_p2)  ;;  %v1992_v21 = vld [vmem:[%s3681_s3 + $0xa0] sm:$0xff] (!%p366_p2)  ;;  %v2675_v23 = vpack.c.bf16 (!%p366_p2), %v428_v14, %v427_v13 }
   0xa   : > { %2664 = vmatprep.subr.bf16.mxu0 (!%p366_p2), %v2663_v5  ;;  %v2707_v18 = vpack.c.bf16 (!%p366_p2), %v1989_v16, %v1988_v15  ;;  %v2711_v20 = vpack.c.bf16 (!%p366_p2), %v1991_v19, %v1990_v17  ;;  %v1993_v22 = vld [vmem:[%s3681_s3 + $0xa8] sm:$0xff] (!%p366_p2)  ;;  %v429_v24 = vld [vmem:[%s3679_s1 + $0x10] sm:$0xff] (!%p366_p2)  ;;  %v430_v25 = vld [vmem:[%s3679_s1 + $0x18] sm:$0xff] (!%p366_p2) }
   0xb   : > { %v2715_v26 = vpack.c.bf16 (!%p366_p2), %v1993_v22, %v1992_v21  ;;  %v1994_v28 = vld [vmem:[%s3681_s3 + $0xb0] sm:$0xff] (!%p366_p2)  ;;  %v1995_v29 = vld [vmem:[%s3681_s3 + $0xb8] sm:$0xff] (!%p366_p2)  ;;  %v2679_v30 = vpack.c.bf16 (!%p366_p2), %v430_v25, %v429_v24  ;;  %v431_v32 = vld [vmem:[%s3679_s1 + $0x20] sm:$0xff] (!%p366_p2) }
   0xc   : > { %2708 = vmatprep.subr.bf16.mxu1 (!%p366_p2), %v2707_v18  ;;  %v432_v33 = vld [vmem:[%s3679_s1 + $0x28] sm:$0xff] (!%p366_p2)  ;;  %v2719_v34 = vpack.c.bf16 (!%p366_p2), %v1995_v29, %v1994_v28  ;;  %v1996_v35 = vld [vmem:[%s3681_s3 + $0xc0] sm:$0xff] (!%p366_p2)  ;;  %v433_v38 = vld [vmem:[%s3679_s1 + $0x30] sm:$0xff] (!%p366_p2) }
   0xd   : > { %s3692_s22 = smov (!%p411_p3, %s1956_s22), 1  ;;  %2666 = vmatpush3.bf16.msra.mxu0 %v2663_v5  ;;  %2710 = vmatpush3.bf16.msra.mxu1 %v2707_v18  ;;  %v1997_v36 = vld [vmem:[%s3681_s3 + $0xc8] sm:$0xff]  ;;  %v2683_v37 = vpack.c.bf16 %v432_v33, %v431_v32  ;;  %v434_v39 = vld [vmem:[%s3679_s1 + $0x38] sm:$0xff]  ;;  %v1977_v42 = vld [vmem:[%s3679_s1 + $0x80] sm:$0xff]  ;;  %v2992_v5 = vmov 0.0  }
   0xe   : > { %s2972_s17 = smul.u32 24, %s3692_s22  ;;  %2668 = vmatprep.subr.bf16.mxu0 %v2667_v8  ;;  %2712 = vmatprep.subr.bf16.mxu1 %v2711_v20  ;;  %v2723_v40 = vpack.c.bf16 %v1997_v36, %v1996_v35  ;;  %v2687_v41 = vpack.c.bf16 %v434_v39, %v433_v38  ;;  %v1978_v43 = vld [vmem:[%s3679_s1 + $0x88] sm:$0xff]  ;;  %v1979_v45 = vld [vmem:[%s3679_s1 + $0x90] sm:$0xff]  ;;  %v1980_v46 = vld [vmem:[%s3679_s1 + $0x98] sm:$0xff]  ;;  %718 = vst [vmem:[#allocation2] sm:$0xff] %v2992_v5  ;;  %s1962_s16 = sshll.u32 %s3692_s22, 3 }
   0xf   : > { %v2691_v44 = vpack.c.bf16 %v1978_v43, %v1977_v42  ;;  %v2695_v48 = vpack.c.bf16 %v1980_v46, %v1979_v45  ;;  %v1981_v50 = vld [vmem:[%s3679_s1 + $0xa0] sm:$0xff]  ;;  %v1982_v51 = vld [vmem:[%s3679_s1 + $0xa8] sm:$0xff]  ;;  %v1983_v53 = vld [vmem:[%s3679_s1 + $0xb0] sm:$0xff]  ;;  %721 = vst [vmem:[#allocation2 + $0x18] sm:$0xff] %v2992_v5  ;;  %s419_s19 = scalar_lea.vmem %s3689_s11, %s1962_s16 }
  0x10   : > { %s3098_s26 = scalar_lea.vmem %s3678_s0, %s2972_s17  ;;  %v2699_v52 = vpack.c.bf16 %v1982_v51, %v1981_v50  ;;  %v1984_v54 = vld [vmem:[%s3679_s1 + $0xb8] sm:$0xff]  ;;  %v1998_v57 = vld [vmem:[%s3681_s3 + $0xd0] sm:$0xff]  ;;  %v2000_v60 = vld [vmem:[%s3681_s3 + $0xe0] sm:$0xff] }
  0x11   : > { %v3101_v11 = vld [vmem:[%s3098_s26 + $0x1] sm:$0xff]  ;;  %2670 = vmatpush3.bf16.msra.mxu0 %v2667_v8  ;;  %v3136_v27 = vld [vmem:[%s3098_s26 + $0x9] sm:$0xff]  ;;  %2714 = vmatpush3.bf16.msra.mxu1 %v2711_v20  ;;  %v2703_v55 = vpack.c.bf16 %v1984_v54, %v1983_v53  ;;  %v1999_v58 = vld [vmem:[%s3681_s3 + $0xd8] sm:$0xff] }
  0x12   : > { %2291 = vmatprep.mubr.msk.f32.mxu0 %vm446_vm0, %v3101_v11  ;;  %2672 = vmatprep.subr.bf16.mxu0 %v2671_v12  ;;  %v425_v31 = vld [vmem:[%s3098_s26] sm:$0xff]  ;;  %v426_v47 = vld [vmem:[%s3098_s26 + $0x8] sm:$0xff]  ;;  %v2727_v59 = vpack.c.bf16 %v1999_v58, %v1998_v57  ;;  %v2002_v63 = vld [vmem:[%s3681_s3 + $0xf0] sm:$0xff] }
  0x13   : > { %2716 = vmatprep.subr.bf16.mxu1 %v2715_v26  ;;  %v609_v49 = vld [vmem:[%s3098_s26 + $0x2] sm:$0xff]  ;;  %v610_v56 = vld [vmem:[%s3098_s26 + $0xa] sm:$0xff]  ;;  %v2003_v0 = vld [vmem:[%s3681_s3 + $0xf8] sm:$0xff]  ;;  %s2082_s26 = sshll.u32 %s3692_s22, 4 }
  0x14   : > { %v2001_v61 = vld [vmem:[%s3681_s3 + $0xe8] sm:$0xff]  ;;  %v2735_v1 = vpack.c.bf16 %v2003_v0, %v2002_v63  ;;  %v724_v2 = vld [vmem:[%s3681_s3] sm:$0xff]  ;;  %v1024_v9 = vld [vmem:[%s3683_s5 + $0x10] sm:$0xff]  ;;  %s424_s15 = scalar_lea.vmem %s3690_s12, %s2082_s26 }
  0x15   : > { %2674 = vmatpush3.bf16.msra.mxu0 %v2671_v12  ;;  %2718 = vmatpush3.bf16.msra.mxu1 %v2715_v26  ;;  %v2731_v62 = vpack.c.bf16 %v2001_v61, %v2000_v60  ;;  %v725_v3 = vld [vmem:[%s3681_s3 + $0x8] sm:$0xff]  ;;  %v1022_v6 = vld [vmem:[%s3683_s5] sm:$0xff]  ;;  %v1025_v10 = vld [vmem:[%s3683_s5 + $0x18] sm:$0xff] }
  0x16   : > { %2676 = vmatprep.subr.bf16.mxu0 %v2675_v23  ;;  %2720 = vmatprep.subr.bf16.mxu1 %v2719_v34  ;;  %v2739_v4 = vpack.c.bf16 %v725_v3, %v724_v2  ;;  %v1023_v7 = vld [vmem:[%s3683_s5 + $0x8] sm:$0xff]  ;;  %v1026_v12 = vld [vmem:[%s3683_s5 + $0x20] sm:$0xff]  ;;  %v1028_v15 = vld [vmem:[%s3683_s5 + $0x30] sm:$0xff] }
  0x17   : > { %v2803_v8 = vpack.c.bf16 %v1023_v7, %v1022_v6  ;;  %v1027_v13 = vld [vmem:[%s3683_s5 + $0x28] sm:$0xff]  ;;  %v1029_v16 = vld [vmem:[%s3683_s5 + $0x38] sm:$0xff]  ;;  %v1987_v18 = vld [vmem:[%s3680_s2] ss:$0 sm:$0xff] }
  0x18   : > { %2292 = vmatmul.mubr.msk.f32.vlgmr.msra.gmra.mrb[0].mxu0 %vm446_vm0, %v3136_v27  ;;  %v2811_v14 = vpack.c.bf16 %v1027_v13, %v1026_v12  ;;  %v2815_v17 = vpack.c.bf16 %v1029_v16, %v1028_v15  ;;  %v726_v24 = vld [vmem:[%s3681_s3 + $0x10] sm:$0xff]  ;;  %v727_v25 = vld [vmem:[%s3681_s3 + $0x18] sm:$0xff]  ;;  %v733_v38 = vld [vmem:[%s3681_s3 + $0x48] sm:$0xff] }
  0x19   : > { %2678 = vmatpush3.bf16.msra.mxu0 %v2675_v23  ;;  %2310 = vmatprep.mubr.msk.f32.mxu0 %vm446_vm0, %v425_v31  ;;  %v2743_v29 = vpack.c.bf16 %v727_v25, %v726_v24  ;;  %v729_v31 = vld [vmem:[%s3681_s3 + $0x28] sm:$0xff]  ;;  %v730_v33 = vld [vmem:[%s3681_s3 + $0x30] sm:$0xff]  ;;  %v736_v43 = vld [vmem:[%s3681_s3 + $0x60] sm:$0xff] }
  0x1a   : > { %2680 = vmatprep.subr.bf16.mxu0 %v2679_v30  ;;  %2722 = vmatpush3.bf16.msra.mxu1 %v2719_v34  ;;  %v731_v34 = vld [vmem:[%s3681_s3 + $0x38] sm:$0xff]  ;;  %v738_v46 = vld [vmem:[%s3681_s3 + $0x70] sm:$0xff]  ;;  %v2005_v50 = vld [vmem:[%s3681_s3 + $0x108] sm:$0xff] }
  0x1b   : > { %2724 = vmatprep.subr.bf16.mxu1 %v2723_v40  ;;  %v2751_v36 = vpack.c.bf16 %v731_v34, %v730_v33  ;;  %v2007_v53 = vld [vmem:[%s3681_s3 + $0x118] sm:$0xff]  ;;  %v2009_v57 = vld [vmem:[%s3681_s3 + $0x128] sm:$0xff]  ;;  %v2010_v60 = vld [vmem:[%s3681_s3 + $0x130] sm:$0xff] }
  0x1c   : > { %v2011_v61 = vld [vmem:[%s3681_s3 + $0x138] sm:$0xff]  ;;  %v2012_v63 = vld [vmem:[%s3681_s3 + $0x140] sm:$0xff]  ;;  %v2013_v0 = vld [vmem:[%s3681_s3 + $0x148] sm:$0xff] }
  0x1d   : > { %2682 = vmatpush3.bf16.msra.mxu0 %v2679_v30  ;;  %v728_v30 = vld [vmem:[%s3681_s3 + $0x20] sm:$0xff]  ;;  %v2014_v2 = vld [vmem:[%s3681_s3 + $0x150] sm:$0xff]  ;;  %v2015_v3 = vld [vmem:[%s3681_s3 + $0x158] sm:$0xff] }
  0x1e   : > { %2684 = vmatprep.subr.bf16.mxu0 %v2683_v37  ;;  %2726 = vmatpush3.bf16.msra.mxu1 %v2723_v40  ;;  %v2747_v32 = vpack.c.bf16 %v729_v31, %v728_v30  ;;  %v734_v40 = vld [vmem:[%s3681_s3 + $0x50] sm:$0xff]  ;;  %v2016_v6 = vld [vmem:[%s3681_s3 + $0x160] sm:$0xff]  ;;  %v2017_v7 = vld [vmem:[%s3681_s3 + $0x168] sm:$0xff] }
  0x1f   : > { %2728 = vmatprep.subr.bf16.mxu1 %v2727_v59  ;;  %v1120_v12 = vld [vmem:[%s3685_s7] sm:$0xff]  ;;  %v1121_v13 = vld [vmem:[%s3685_s7 + $0x8] sm:$0xff]  ;;  %v1122_v15 = vld [vmem:[%s3685_s7 + $0x10] sm:$0xff] }
  0x20   : > { %v1123_v16 = vld [vmem:[%s3685_s7 + $0x18] sm:$0xff]  ;;  %v1128_v25 = vld [vmem:[%s3685_s7 + $0x40] sm:$0xff] }
  0x21   : > { %2686 = vmatpush3.bf16.msra.mxu0 %v2683_v37  ;;  %v732_v37 = vld [vmem:[%s3681_s3 + $0x40] sm:$0xff] }
  0x22   : > { %2688 = vmatprep.subr.bf16.mxu0 %v2687_v41  ;;  %2730 = vmatpush3.bf16.msra.mxu1 %v2727_v59  ;;  %v2755_v39 = vpack.c.bf16 %v733_v38, %v732_v37  ;;  %v1132_v31 = vld [vmem:[%s3685_s7 + $0x60] sm:$0xff]  ;;  %v1135_v37 = vld [vmem:[%s3685_s7 + $0x78] sm:$0xff] }
  0x23   : > { %2732 = vmatprep.subr.bf16.mxu1 %v2731_v62 }
  0x25   : > { %2690 = vmatpush3.bf16.msra.mxu0 %v2687_v41  ;;  %v735_v41 = vld [vmem:[%s3681_s3 + $0x58] sm:$0xff] }
  0x26   : > { %2692 = vmatprep.subr.bf16.mxu0 %v2691_v44  ;;  %2734 = vmatpush3.bf16.msra.mxu1 %v2731_v62  ;;  %v2759_v42 = vpack.c.bf16 %v735_v41, %v734_v40  ;;  %v2783_v62 = vpack.c.bf16 %v2011_v61, %v2010_v60  ;;  %v2020_v40 = vld [vmem:[%s3682_s4] ss:$0 sm:$0xff] }
  0x27   : > { %2736 = vmatprep.subr.bf16.mxu1 %v2735_v1  ;;  %v2021_v41 = vld [vmem:[%s3684_s6] ss:$0 sm:$0xff] }
  0x28   : > { %2311 = vmatmul.mubr.msk.f32.vlgmr.msra.gmra.mrb[0].mxu0 %vm446_vm0, %v426_v47  ;;  %v739_v47 = vld [vmem:[%s3681_s3 + $0x78] sm:$0xff]  ;;  %v1220_v60 = vld [vmem:[%s3687_s9] sm:$0xff] }
  0x29   : > { %2694 = vmatpush3.bf16.msra.mxu0 %v2691_v44  ;;  %2329 = vmatprep.mubr.msk.f32.mxu0 %vm446_vm0, %v609_v49  ;;  %v737_v44 = vld [vmem:[%s3681_s3 + $0x68] sm:$0xff]  ;;  %v2004_v49 = vld [vmem:[%s3681_s3 + $0x100] sm:$0xff] }
  0x2a   : > { %2696 = vmatprep.subr.bf16.mxu0 %v2695_v48  ;;  %2738 = vmatpush3.bf16.msra.mxu1 %v2735_v1  ;;  %v2763_v45 = vpack.c.bf16 %v737_v44, %v736_v43  ;;  %v2771_v51 = vpack.c.bf16 %v2005_v50, %v2004_v49  ;;  %v2787_v1 = vpack.c.bf16 %v2013_v0, %v2012_v63  ;;  %v2028_v50 = vld [vmem:[%s3688_s10 + $0x80] sm:$0xff] }
  0x2b   : > { %2740 = vmatprep.subr.bf16.mxu1 %v2739_v4  ;;  %v1295_v61 = vld [vmem:[%s3688_s10] sm:$0xff] }
  0x2c   : > { %v2032_v0 = vld [vmem:[%s3688_s10 + $0xa0] sm:$0xff] }
  0x2d   : > { %2698 = vmatpush3.bf16.msra.mxu0 %v2695_v48  ;;  %v2767_v48 = vpack.c.bf16 %v739_v47, %v738_v46 }
  0x2e   : > { %2700 = vmatprep.subr.bf16.mxu0 %v2699_v52 }
  0x31   : > { %2702 = vmatpush3.bf16.msra.mxu0 %v2699_v52  ;;  %v2006_v52 = vld [vmem:[%s3681_s3 + $0x110] sm:$0xff] }
  0x32   : > { %2704 = vmatprep.subr.bf16.mxu0 %v2703_v55  ;;  %v2775_v54 = vpack.c.bf16 %v2007_v53, %v2006_v52 }
  0x35   : > { %2706 = vmatpush3.bf16.msra.mxu0 %v2703_v55 }
  0x36   : > { %2804 = vmatprep.subr.bf16.mxu0 %v2803_v8 }
  0x38   : > { %2330 = vmatmul.mubr.msk.f32.vlgmr.msra.gmra.mrb[0].mxu0 %vm446_vm0, %v610_v56  ;;  %v2008_v56 = vld [vmem:[%s3681_s3 + $0x120] sm:$0xff] }
  0x39   : > { %2453 = vmatprep.mubr.msk.f32.mxu0 %vm446_vm0, %v3101_v11  ;;  %2806 = vmatpush3.bf16.msra.mxu0 %v2803_v8  ;;  %v2807_v11 = vpack.c.bf16 %v1025_v10, %v1024_v9  ;;  %v2779_v59 = vpack.c.bf16 %v2009_v57, %v2008_v56  ;;  %v2795_v8 = vpack.c.bf16 %v2017_v7, %v2016_v6  ;;  %v2018_v9 = vld [vmem:[%s3681_s3 + $0x170] sm:$0xff]  ;;  %v2019_v10 = vld [vmem:[%s3681_s3 + $0x178] sm:$0xff] }
  0x3a   : > { %v1298_v6 = vld [vmem:[%s3688_s10 + $0x18] sm:$0xff] }
  0x3b   : > { %2808 = vmatprep.subr.bf16.mxu0 %v2807_v11 }
  0x3d   : > { %2810 = vmatpush3.bf16.msra.mxu0 %v2807_v11  ;;  %v2799_v11 = vpack.c.bf16 %v2019_v10, %v2018_v9  ;;  %v2035_v9 = vld [vmem:[%s3688_s10 + $0xb8] sm:$0xff] }
  0x3e   : > { %2812 = vmatprep.subr.bf16.mxu0 %v2811_v14 }
  0x41   : > { %2814 = vmatpush3.bf16.msra.mxu0 %v2811_v14  ;;  %v2819_v14 = vpack.c.bf16 %v1121_v13, %v1120_v12  ;;  %v1300_v12 = vld [vmem:[%s3688_s10 + $0x28] sm:$0xff] }
  0x42   : > { %2816 = vmatprep.subr.bf16.mxu0 %v2815_v17 }
  0x45   : > { %2818 = vmatpush3.bf16.msra.mxu0 %v2815_v17  ;;  %v2823_v17 = vpack.c.bf16 %v1123_v16, %v1122_v15  ;;  %v2037_v15 = vld [vmem:[%s3688_s10 + $0xc8] sm:$0xff] }
  0x48   : > { %2454 = vmatmul.mubr.msk.f32.vlgmr.msra.gmra.mrb[2].mxu0 %vm446_vm0, %v3136_v27 }
  0x49   : > { %2495 = vmatprep.mubr.msk.f32.mxu0 %vm2994_vm3, %v2992_v5 }
 0x10b   : > { %v2331_v19 = vpop.f32.mrb[0].mxu0 }
 0x10c   : > { %v711_v20 = vadd.f32 %v2331_v19, %v1987_v18  ;;  %v692_v21 = vpop.f32.mrb[1].mxu0  ;;  %v1124_v19 = vld [vmem:[%s3685_s7 + $0x20] sm:$0xff] }
 0x10d   : > { %v710_v22 = vadd.f32 %v1987_v18, %v692_v21 }
 0x10e   : > { %vm713_vm1 = vcmp.ge.f32.partialorder %v711_v20, 0.0  ;;  %v715_v23 = vmul.f32 0.2, %v711_v20 }
 0x10f   : > { %vm712_vm2 = vcmp.ge.f32.partialorder %v710_v22, 0.0  ;;  %v714_v26 = vmul.f32 0.2, %v710_v22 }
 0x110   : > { %v717_v27 = vsel %vm713_vm1, %v711_v20, %v715_v23  ;;  %v1125_v20 = vld [vmem:[%s3685_s7 + $0x28] sm:$0xff]  ;;  %v1127_v23 = vld [vmem:[%s3685_s7 + $0x38] sm:$0xff] }
 0x111   : > { %720 = vst [vmem:[#allocation2 + $0x10] sm:$0xff] %v717_v27  ;;  %v716_v28 = vsel %vm712_vm2, %v710_v22, %v714_v26  ;;  %v2827_v21 = vpack.c.bf16 %v1125_v20, %v1124_v19  ;;  %v1126_v22 = vld [vmem:[%s3685_s7 + $0x30] sm:$0xff]  ;;  %v1129_v26 = vld [vmem:[%s3685_s7 + $0x48] sm:$0xff] }
 0x112   : > { %719 = vst [vmem:[#allocation2 + $0x8] sm:$0xff] %v716_v28  ;;  %2364 = vmatprep.mubr.f32.mxu1 %v716_v28  ;;  %v2831_v24 = vpack.c.bf16 %v1127_v23, %v1126_v22  ;;  %v1130_v28 = vld [vmem:[%s3685_s7 + $0x50] sm:$0xff]  ;;  %v1303_v23 = vld [vmem:[%s3688_s10 + $0x40] sm:$0xff] }
 0x113   : > { %2365 = vmatmul.mubr.f32.vlgmr.msra.gmra.mrb[0].mxu1 %v717_v27  ;;  %v2835_v27 = vpack.c.bf16 %v1129_v26, %v1128_v25  ;;  %v2038_v20 = vld [vmem:[%s3688_s10 + $0xd0] sm:$0xff] }
 0x114   : > { %2742 = vmatpush3.bf16.msra.mxu1 %v2739_v4  ;;  %v2791_v4 = vpack.c.bf16 %v2015_v3, %v2014_v2  ;;  %v2026_v2 = vld [vmem:[%s3687_s9 + $0x8] sm:$0xff] }
 0x115   : > { %2744 = vmatprep.subr.bf16.mxu1 %v2743_v29 }
 0x118   : > { %2746 = vmatpush3.bf16.msra.mxu1 %v2743_v29  ;;  %v910_v18 = vld [vmem:[#allocation2 + $0x11] sm:$0xff] }
 0x119   : > { %v722_v35 = vld [vmem:[#allocation2 + $0x7] sm:$0xff]  ;;  %2748 = vmatprep.subr.bf16.mxu1 %v2747_v32  ;;  %v723_v55 = vld [vmem:[#allocation2 + $0xf] sm:$0xff]  ;;  %v1131_v29 = vld [vmem:[%s3685_s7 + $0x58] sm:$0xff] }
 0x11a   : > { %2399 = vmatprep.mubr.f32.mxu1 %v722_v35  ;;  %v909_v58 = vld [vmem:[#allocation2 + $0x9] sm:$0xff]  ;;  %v2839_v30 = vpack.c.bf16 %v1131_v29, %v1130_v28  ;;  %v1306_v28 = vld [vmem:[%s3688_s10 + $0x58] sm:$0xff] }
 0x11b   : > { %v2455_v34 = vpop.f32.mrb[2].mxu0 }
 0x11c   : > { %2750 = vmatpush3.bf16.msra.mxu1 %v2747_v32  ;;  %v1133_v32 = vld [vmem:[%s3685_s7 + $0x68] sm:$0xff]  ;;  %v1109_v35 = vpop.f32.mrb[3].mxu0  ;;  %v1115_v46 = vadd.f32 %v2455_v34, %v2021_v41 }
 0x11d   : > { %2752 = vmatprep.subr.bf16.mxu1 %v2751_v36  ;;  %v2843_v33 = vpack.c.bf16 %v1133_v32, %v1132_v31  ;;  %v1308_v31 = vld [vmem:[%s3688_s10 + $0x68] sm:$0xff] }
 0x11e   : > { %v2041_v34 = vld [vmem:[%s3688_s10 + $0xe8] sm:$0xff] }
 0x120   : > { %2754 = vmatpush3.bf16.msra.mxu1 %v2751_v36  ;;  %v1134_v36 = vld [vmem:[%s3685_s7 + $0x70] sm:$0xff] }
 0x121   : > { %2756 = vmatprep.subr.bf16.mxu1 %v2755_v39  ;;  %v2847_v38 = vpack.c.bf16 %v1135_v37, %v1134_v36  ;;  %v1309_v36 = vld [vmem:[%s3688_s10 + $0x70] sm:$0xff]  ;;  %v1310_v37 = vld [vmem:[%s3688_s10 + $0x78] sm:$0xff] }
 0x124   : > { %2758 = vmatpush3.bf16.msra.mxu1 %v2755_v39  ;;  %v2993_v39 = vmov 0.0|0.0  }
 0x125   : > { %2760 = vmatprep.subr.bf16.mxu1 %v2759_v42  ;;  %2851 = vmatprep.subr.bf16.mxu0 %v2993_v39 }
 0x128   : > { %2762 = vmatpush3.bf16.msra.mxu1 %v2759_v42 }
 0x129   : > { %2764 = vmatprep.subr.bf16.mxu1 %v2763_v45 }
 0x12c   : > { %2766 = vmatpush3.bf16.msra.mxu1 %v2763_v45 }
 0x12d   : > { %2768 = vmatprep.subr.bf16.mxu1 %v2767_v48 }
 0x130   : > { %2770 = vmatpush3.bf16.msra.mxu1 %v2767_v48  ;;  %v1110_v48 = vadd.f32 %v2021_v41, %v1109_v35  ;;  %v2043_v41 = vld [vmem:[%s3688_s10 + $0xf8] sm:$0xff] }
 0x131   : > { %2772 = vmatprep.subr.bf16.mxu1 %v2771_v51 }
 0x133   : > { %2400 = vmatmul.mubr.f32.vlgmr.msra.gmra.mrb[0].mxu1 %v723_v55 }
 0x134   : > { %2774 = vmatpush3.bf16.msra.mxu1 %v2771_v51  ;;  %2434 = vmatprep.mubr.f32.mxu1 %v909_v58  ;;  %v2029_v51 = vld [vmem:[%s3688_s10 + $0x88] sm:$0xff]  ;;  %v2030_v58 = vld [vmem:[%s3688_s10 + $0x90] sm:$0xff] }
 0x135   : > { %2776 = vmatprep.subr.bf16.mxu1 %v2775_v54  ;;  %v2858_v56 = vpack.c.bf16 %v2029_v51, %v2028_v50 }
 0x138   : > { %2778 = vmatpush3.bf16.msra.mxu1 %v2775_v54 }
 0x139   : > { %2780 = vmatprep.subr.bf16.mxu1 %v2779_v59 }
 0x13c   : > { %2782 = vmatpush3.bf16.msra.mxu1 %v2779_v59  ;;  %v2031_v59 = vld [vmem:[%s3688_s10 + $0x98] sm:$0xff] }
 0x13d   : > { %2784 = vmatprep.subr.bf16.mxu1 %v2783_v62  ;;  %v2861_v63 = vpack.c.bf16 %v2031_v59, %v2030_v58  ;;  %v2050_v58 = vld [vmem:[%s3688_s10 + $0x120] sm:$0xff]  ;;  %v2051_v59 = vld [vmem:[%s3688_s10 + $0x128] sm:$0xff] }
 0x140   : > { %2786 = vmatpush3.bf16.msra.mxu1 %v2783_v62  ;;  %v1296_v62 = vld [vmem:[%s3688_s10 + $0x8] sm:$0xff] }
 0x141   : > { %2788 = vmatprep.subr.bf16.mxu1 %v2787_v1  ;;  %v2882_v3 = vpack.c.bf16 %v1296_v62, %v1295_v61  ;;  %v2044_v61 = vld [vmem:[%s3687_s9 + $0x10] sm:$0xff]  ;;  %v2915_v62 = vpack.c.bf16 %v2051_v59, %v2050_v58 }
 0x144   : > { %2790 = vmatpush3.bf16.msra.mxu1 %v2787_v1  ;;  %v2033_v1 = vld [vmem:[%s3688_s10 + $0xa8] sm:$0xff] }
 0x145   : > { %2792 = vmatprep.subr.bf16.mxu1 %v2791_v4  ;;  %v2864_v7 = vpack.c.bf16 %v2033_v1, %v2032_v0  ;;  %v2053_v0 = vld [vmem:[%s3688_s10 + $0x138] sm:$0xff] }
 0x146   : > { %v2062_v1 = vld [vmem:[%s3687_s9 + $0x18] sm:$0xff] }
 0x148   : > { %2794 = vmatpush3.bf16.msra.mxu1 %v2791_v4  ;;  %v1297_v4 = vld [vmem:[%s3688_s10 + $0x10] sm:$0xff] }
 0x149   : > { %2796 = vmatprep.subr.bf16.mxu1 %v2795_v8  ;;  %v2885_v10 = vpack.c.bf16 %v1298_v6, %v1297_v4  ;;  %v2055_v4 = vld [vmem:[%s3688_s10 + $0x148] sm:$0xff]  ;;  %v2056_v6 = vld [vmem:[%s3688_s10 + $0x150] sm:$0xff] }
 0x14c   : > { %2798 = vmatpush3.bf16.msra.mxu1 %v2795_v8  ;;  %v2034_v8 = vld [vmem:[%s3688_s10 + $0xb0] sm:$0xff] }
 0x14d   : > { %2800 = vmatprep.subr.bf16.mxu1 %v2799_v11  ;;  %v2867_v13 = vpack.c.bf16 %v2035_v9, %v2034_v8  ;;  %v2058_v9 = vld [vmem:[%s3688_s10 + $0x160] sm:$0xff] }
 0x150   : > { %2802 = vmatpush3.bf16.msra.mxu1 %v2799_v11  ;;  %v1299_v11 = vld [vmem:[%s3688_s10 + $0x20] sm:$0xff] }
 0x151   : > { %2820 = vmatprep.subr.bf16.mxu1 %v2819_v14  ;;  %v2888_v16 = vpack.c.bf16 %v1300_v12, %v1299_v11  ;;  %v2060_v12 = vld [vmem:[%s3688_s10 + $0x170] sm:$0xff] }
 0x153   : > { %2435 = vmatmul.mubr.f32.vlgmr.msra.gmra.mrb[0].mxu1 %v910_v18  ;;  %v1302_v18 = vld [vmem:[%s3688_s10 + $0x38] sm:$0xff] }
 0x154   : > { %2822 = vmatpush3.bf16.msra.mxu1 %v2819_v14  ;;  %v2036_v14 = vld [vmem:[%s3688_s10 + $0xc0] sm:$0xff] }
 0x155   : > { %2824 = vmatprep.subr.bf16.mxu1 %v2823_v17  ;;  %v2870_v19 = vpack.c.bf16 %v2037_v15, %v2036_v14  ;;  %v2064_v15 = vld [vmem:[%s3688_s10 + $0x180] sm:$0xff] }
 0x158   : > { %2826 = vmatpush3.bf16.msra.mxu1 %v2823_v17  ;;  %v1301_v17 = vld [vmem:[%s3688_s10 + $0x30] sm:$0xff] }
 0x159   : > { %2828 = vmatprep.subr.bf16.mxu1 %v2827_v21  ;;  %v2891_v22 = vpack.c.bf16 %v1302_v18, %v1301_v17 }
 0x15c   : > { %2830 = vmatpush3.bf16.msra.mxu1 %v2827_v21  ;;  %v2039_v21 = vld [vmem:[%s3688_s10 + $0xd8] sm:$0xff] }
 0x15d   : > { %2832 = vmatprep.subr.bf16.mxu1 %v2831_v24  ;;  %v2873_v25 = vpack.c.bf16 %v2039_v21, %v2038_v20  ;;  %v2066_v20 = vld [vmem:[%s3688_s10 + $0x190] sm:$0xff]  ;;  %v2067_v21 = vld [vmem:[%s3688_s10 + $0x198] sm:$0xff] }
 0x160   : > { %2834 = vmatpush3.bf16.msra.mxu1 %v2831_v24  ;;  %v1304_v24 = vld [vmem:[%s3688_s10 + $0x48] sm:$0xff] }
 0x161   : > { %2836 = vmatprep.subr.bf16.mxu1 %v2835_v27  ;;  %v2894_v26 = vpack.c.bf16 %v1304_v24, %v1303_v23  ;;  %v2939_v24 = vpack.c.bf16 %v2067_v21, %v2066_v20 }
 0x164   : > { %2838 = vmatpush3.bf16.msra.mxu1 %v2835_v27  ;;  %v1305_v27 = vld [vmem:[%s3688_s10 + $0x50] sm:$0xff] }
 0x165   : > { %2840 = vmatprep.subr.bf16.mxu1 %v2839_v30  ;;  %v2897_v29 = vpack.c.bf16 %v1306_v28, %v1305_v27 }
 0x168   : > { %2842 = vmatpush3.bf16.msra.mxu1 %v2839_v30  ;;  %v1307_v30 = vld [vmem:[%s3688_s10 + $0x60] sm:$0xff] }
 0x169   : > { %2844 = vmatprep.subr.bf16.mxu1 %v2843_v33  ;;  %v2900_v32 = vpack.c.bf16 %v1308_v31, %v1307_v30  ;;  %v2071_v30 = vld [vmem:[%s3688_s10 + $0x1b8] sm:$0xff] }
 0x16c   : > { %2846 = vmatpush3.bf16.msra.mxu1 %v2843_v33  ;;  %v2040_v33 = vld [vmem:[%s3688_s10 + $0xe0] sm:$0xff] }
 0x16d   : > { %2848 = vmatprep.subr.bf16.mxu1 %v2847_v38  ;;  %v2876_v35 = vpack.c.bf16 %v2041_v34, %v2040_v33  ;;  %v2073_v33 = vld [vmem:[%s3688_s10 + $0x1c8] sm:$0xff] }
 0x170   : > { %2850 = vmatpush3.bf16.msra.mxu1 %v2847_v38  ;;  %v2903_v38 = vpack.c.bf16 %v1310_v37, %v1309_v36  ;;  %v2075_v36 = vld [vmem:[%s3688_s10 + $0x1d8] sm:$0xff] }
 0x171   : > { %2857 = vmatprep.subr.bf16.mxu1 %v2993_v39 }
 0x226   : > { %v2436_v42 = vpop.f32.mrb[0].mxu1 }
 0x227   : > { %v1013_v43 = vadd.f32 %v2436_v42, %v2020_v40  ;;  %v994_v44 = vpop.f32.mrb[1].mxu1 }
 0x228   : > { %v1012_v45 = vadd.f32 %v2020_v40, %v994_v44  ;;  %v2042_v40 = vld [vmem:[%s3688_s10 + $0xf0] sm:$0xff]  ;;  %v2046_v44 = vld [vmem:[%s3688_s10 + $0x100] sm:$0xff] }
 0x229   : > { %vm1015_vm4 = vcmp.ge.f32.partialorder %v1013_v43, 0.0  ;;  %v1017_v47 = vmul.f32 0.2, %v1013_v43  ;;  %v2879_v42 = vpack.c.bf16 %v2043_v41, %v2042_v40  ;;  %v2077_v40 = vld [vmem:[%s3688_s10 + $0x1e8] sm:$0xff] }
 0x22a   : > { %vm1014_vm5 = vcmp.ge.f32.partialorder %v1012_v45, 0.0  ;;  %v1016_v49 = vmul.f32 0.2, %v1012_v45 }
 0x22b   : > { %v1019_v52 = vsel %vm1015_vm4, %v1013_v43, %v1017_v47  ;;  %v2024_v43 = vld [vmem:[%s3686_s8] ss:$0 sm:$0xff] }
 0x22c   : > { %v1119_v53 = vadd.f32 %v1115_v46, %v1019_v52  ;;  %v1018_v54 = vsel %vm1014_vm5, %v1012_v45, %v1016_v49  ;;  %v2047_v45 = vld [vmem:[%s3688_s10 + $0x108] sm:$0xff]  ;;  %v2048_v52 = vld [vmem:[%s3688_s10 + $0x110] sm:$0xff] }
 0x22d   : > { %v1118_v55 = vadd.f32 %v1110_v48, %v1018_v54  ;;  %v2909_v50 = vpack.c.bf16 %v2047_v45, %v2046_v44 }
 0x22f   : > { %v3407_v57 = vpack.c.bf16 %v1119_v53, %v1118_v55  ;;  %2488 = vmatprep.mubr.f32.mxu1 %v1118_v55 }
 0x230   : > { %2489 = vmatmul.mubr.f32.vlgmr.msra.gmra.mrb[2].mxu1 %v1119_v53  ;;  %v2049_v53 = vld [vmem:[%s3688_s10 + $0x118] sm:$0xff] }
 0x231   : > { %2853 = vmatpush3.bf16.msra.mxu0 %v3407_v57  ;;  %2859 = vmatpush3.bf16.msra.mxu1 %v2858_v56  ;;  %v2912_v55 = vpack.c.bf16 %v2049_v53, %v2048_v52 }
 0x232   : > { %2854 = vmatprep.subr.bf16.mxu0 %v2993_v39  ;;  %2860 = vmatprep.subr.bf16.mxu1 %v2993_v39 }
 0x233   : > { %2537 = vmatprep.mubr.msk.f32.mxu1 %vm2994_vm3, %v2992_v5 }
 0x234   : > { %2496 = vmatmul.mubr.msk.f32.vlgmr.msra.gmra.mrb[4].mxu0 %vm1221_vm6, %v1220_v60 }
 0x235   : > { %2856 = vmatpush3.bf16.msra.mxu0 %v3407_v57  ;;  %2502 = vmatprep.mubr.msk.f32.mxu0 %vm2994_vm3, %v2992_v5 }
 0x236   : > { %2881 = vmatprep.subr.bf16.mxu0 %v2993_v39  ;;  %2862 = vmatpush3.bf16.msra.mxu1 %v2861_v63  ;;  %v2052_v63 = vld [vmem:[%s3688_s10 + $0x130] sm:$0xff] }
 0x237   : > { %2863 = vmatprep.subr.bf16.mxu1 %v2993_v39 }
 0x238   : > { %2503 = vmatmul.mubr.msk.f32.vlgmr.msra.gmra.mrb[6].mxu0 %vm1221_vm6, %v2026_v2  ;;  %v2918_v2 = vpack.c.bf16 %v2053_v0, %v2052_v63 }
 0x239   : > { %2883 = vmatpush3.bf16.msra.mxu0 %v2882_v3  ;;  %2572 = vmatprep.mubr.msk.f32.mxu0 %vm2994_vm3, %v2992_v5  ;;  %v2054_v3 = vld [vmem:[%s3688_s10 + $0x140] sm:$0xff] }
 0x23a   : > { %2884 = vmatprep.subr.bf16.mxu0 %v2993_v39  ;;  %2865 = vmatpush3.bf16.msra.mxu1 %v2864_v7  ;;  %v2057_v7 = vld [vmem:[%s3688_s10 + $0x158] sm:$0xff] }
 0x23b   : > { %2866 = vmatprep.subr.bf16.mxu1 %v2993_v39  ;;  %v2924_v8 = vpack.c.bf16 %v2057_v7, %v2056_v6 }
 0x23d   : > { %2886 = vmatpush3.bf16.msra.mxu0 %v2885_v10  ;;  %v2059_v10 = vld [vmem:[%s3688_s10 + $0x168] sm:$0xff] }
 0x23e   : > { %2887 = vmatprep.subr.bf16.mxu0 %v2993_v39  ;;  %2868 = vmatpush3.bf16.msra.mxu1 %v2867_v13  ;;  %v2927_v11 = vpack.c.bf16 %v2059_v10, %v2058_v9  ;;  %v2061_v13 = vld [vmem:[%s3688_s10 + $0x178] sm:$0xff] }
 0x23f   : > { %2869 = vmatprep.subr.bf16.mxu1 %v2993_v39  ;;  %v2930_v14 = vpack.c.bf16 %v2061_v13, %v2060_v12 }
 0x241   : > { %2889 = vmatpush3.bf16.msra.mxu0 %v2888_v16  ;;  %v2065_v16 = vld [vmem:[%s3688_s10 + $0x188] sm:$0xff] }
 0x242   : > { %2890 = vmatprep.subr.bf16.mxu0 %v2993_v39  ;;  %2871 = vmatpush3.bf16.msra.mxu1 %v2870_v19  ;;  %v2936_v19 = vpack.c.bf16 %v2065_v16, %v2064_v15 }
 0x243   : > { %2872 = vmatprep.subr.bf16.mxu1 %v2993_v39 }
 0x245   : > { %2892 = vmatpush3.bf16.msra.mxu0 %v2891_v22 }
 0x246   : > { %2893 = vmatprep.subr.bf16.mxu0 %v2993_v39  ;;  %2874 = vmatpush3.bf16.msra.mxu1 %v2873_v25  ;;  %v2068_v25 = vld [vmem:[%s3688_s10 + $0x1a0] sm:$0xff] }
 0x247   : > { %2875 = vmatprep.subr.bf16.mxu1 %v2993_v39 }
 0x249   : > { %2895 = vmatpush3.bf16.msra.mxu0 %v2894_v26  ;;  %v2069_v26 = vld [vmem:[%s3688_s10 + $0x1a8] sm:$0xff] }
 0x24a   : > { %2896 = vmatprep.subr.bf16.mxu0 %v2993_v39  ;;  %2877 = vmatpush3.bf16.msra.mxu1 %v2876_v35  ;;  %v2074_v35 = vld [vmem:[%s3688_s10 + $0x1d0] sm:$0xff] }
 0x24b   : > { %2878 = vmatprep.subr.bf16.mxu1 %v2993_v39  ;;  %v2951_v37 = vpack.c.bf16 %v2075_v36, %v2074_v35 }
 0x24d   : > { %2898 = vmatpush3.bf16.msra.mxu0 %v2897_v29  ;;  %v2942_v29 = vpack.c.bf16 %v2069_v26, %v2068_v25 }
 0x24e   : > { %2899 = vmatprep.subr.bf16.mxu0 %v2993_v39  ;;  %2880 = vmatpush3.bf16.msra.mxu1 %v2879_v42  ;;  %v2078_v42 = vld [vmem:[%s3688_s10 + $0x1f0] sm:$0xff] }
 0x24f   : > { %2905 = vmatprep.subr.bf16.mxu1 %v2993_v39 }
 0x251   : > { %2901 = vmatpush3.bf16.msra.mxu0 %v2900_v32  ;;  %v2072_v32 = vld [vmem:[%s3688_s10 + $0x1c0] sm:$0xff] }
 0x252   : > { %2902 = vmatprep.subr.bf16.mxu0 %v2993_v39  ;;  %v2948_v34 = vpack.c.bf16 %v2073_v33, %v2072_v32 }
 0x255   : > { %2904 = vmatpush3.bf16.msra.mxu0 %v2903_v38  ;;  %v2076_v38 = vld [vmem:[%s3688_s10 + $0x1e0] sm:$0xff] }
 0x256   : > { %2908 = vmatprep.subr.bf16.mxu0 %v2993_v39  ;;  %v2954_v41 = vpack.c.bf16 %v2077_v40, %v2076_v38 }
 0x303   : > { %v2490_v46 = vpop.f32.mrb[2].mxu1 }
 0x304   : > { %v1215_v47 = vadd.f32 %v2490_v46, %v2024_v43  ;;  %v1209_v48 = vpop.f32.mrb[3].mxu1 }
 0x305   : > { %v1210_v49 = vadd.f32 %v2024_v43, %v1209_v48  ;;  %v2079_v43 = vld [vmem:[%s3688_s10 + $0x1f8] sm:$0xff] }
 0x306   : > { %1219 = vst [vmem:[%s424_s15 + $0x8] sm:$0xff] %v1215_v47  ;;  %v2957_v44 = vpack.c.bf16 %v2079_v43, %v2078_v42 }
 0x307   : > { %1218 = vst [vmem:[%s424_s15] sm:$0xff] %v1210_v49  ;;  %v1291_v51 = vpop.f32.mrb[4].mxu0 }
 0x308   : > { %v2497_v54 = vpop.f32.mrb[5].mxu0  ;;  %2573 = vmatmul.mubr.f32.vlgmr.msra.gmra.mrb[8].mxu0 %v1291_v51 }
 0x309   : > { %2910 = vmatpush3.bf16.msra.mxu0 %v2909_v50  ;;  %2614 = vmatprep.mubr.msk.f32.mxu0 %vm2994_vm3, %v2992_v5 }
 0x30a   : > { %2911 = vmatprep.subr.bf16.mxu0 %v2993_v39 }
 0x30b   : > { %v1382_v56 = vpop.f32.mrb[6].mxu0 }
 0x30c   : > { %v2504_v60 = vpop.f32.mrb[7].mxu0  ;;  %2538 = vmatmul.mubr.f32.vlgmr.msra.gmra.mrb[4].mxu1 %v1382_v56 }
 0x30d   : > { %2907 = vmatpush3.bf16.msra.mxu1 %v3407_v57  ;;  %2579 = vmatprep.mubr.msk.f32.mxu1 %vm2994_vm3, %v2992_v5 }
 0x30e   : > { %2932 = vmatprep.subr.bf16.mxu1 %v2993_v39  ;;  %2913 = vmatpush3.bf16.msra.mxu0 %v2912_v55 }
 0x30f   : > { %2914 = vmatprep.subr.bf16.mxu0 %v2993_v39 }
 0x310   : > { %2580 = vmatmul.mubr.msk.f32.vlgmr.msra.gmra.mrb[6].mxu1 %vm1221_vm6, %v2044_v61 }
 0x311   : > { %2934 = vmatpush3.bf16.msra.mxu1 %v3407_v57  ;;  %2621 = vmatprep.mubr.msk.f32.mxu1 %vm2994_vm3, %v2992_v5  ;;  %v2921_v57 = vpack.c.bf16 %v2055_v4, %v2054_v3 }
 0x312   : > { %2916 = vmatpush3.bf16.msra.mxu0 %v2915_v62 }
 0x313   : > { %2917 = vmatprep.subr.bf16.mxu0 %v2993_v39 }
 0x314   : > { %2622 = vmatmul.mubr.msk.f32.vlgmr.msra.gmra.mrb[8].mxu1 %vm1221_vm6, %v2062_v1 }
 0x316   : > { %2919 = vmatpush3.bf16.msra.mxu0 %v2918_v2 }
 0x317   : > { %2920 = vmatprep.subr.bf16.mxu0 %v2993_v39 }
 0x31a   : > { %2922 = vmatpush3.bf16.msra.mxu0 %v2921_v57 }
 0x31b   : > { %2923 = vmatprep.subr.bf16.mxu0 %v2993_v39 }
 0x31e   : > { %2925 = vmatpush3.bf16.msra.mxu0 %v2924_v8 }
 0x31f   : > { %2926 = vmatprep.subr.bf16.mxu0 %v2993_v39 }
 0x322   : > { %2928 = vmatpush3.bf16.msra.mxu0 %v2927_v11 }
 0x323   : > { %2929 = vmatprep.subr.bf16.mxu0 %v2993_v39 }
 0x326   : > { %2931 = vmatpush3.bf16.msra.mxu0 %v2930_v14 }
 0x327   : > { %2935 = vmatprep.subr.bf16.mxu0 %v2993_v39 }
 0x3df   : > { %v1469_v17 = vpop.f32.mrb[4].mxu1 }
 0x3e0   : > { %v2539_v18 = vpop.f32.mrb[5].mxu1 }
 0x3e3   : > { %v1614_v22 = vpop.f32.mrb[6].mxu1 }
 0x3e4   : > { %v2581_v23 = vpop.f32.mrb[7].mxu1  ;;  %2615 = vmatmul.mubr.f32.vlgmr.msra.gmra.mrb[8].mxu0 %v1614_v22 }
 0x3e5   : > { %2937 = vmatpush3.bf16.msra.mxu0 %v2936_v19  ;;  %2656 = vmatprep.mubr.msk.f32.mxu0 %vm2994_vm3, %v2992_v5  ;;  %v2070_v5 = vld [vmem:[%s3688_s10 + $0x1b0] sm:$0xff] }
 0x3e6   : > { %2938 = vmatprep.subr.bf16.mxu0 %v2993_v39  ;;  %v2945_v31 = vpack.c.bf16 %v2071_v30, %v2070_v5 }
 0x3e7   : > { %v1777_v27 = vpop.f32.mrb[8].mxu1 }
 0x3e8   : > { %v2623_v28 = vpop.f32.mrb[9].mxu1 }
 0x3e9   : > { %2940 = vmatpush3.bf16.msra.mxu0 %v2939_v24 }
 0x3ea   : > { %2941 = vmatprep.subr.bf16.mxu0 %v2993_v39 }
 0x3ed   : > { %2943 = vmatpush3.bf16.msra.mxu0 %v2942_v29 }
 0x3ee   : > { %2944 = vmatprep.subr.bf16.mxu0 %v2993_v39 }
 0x3f1   : > { %2946 = vmatpush3.bf16.msra.mxu0 %v2945_v31 }
 0x3f2   : > { %2947 = vmatprep.subr.bf16.mxu0 %v2993_v39 }
 0x3f5   : > { %2949 = vmatpush3.bf16.msra.mxu0 %v2948_v34 }
 0x3f6   : > { %2950 = vmatprep.subr.bf16.mxu0 %v2993_v39 }
 0x3f9   : > { %2952 = vmatpush3.bf16.msra.mxu0 %v2951_v37 }
 0x3fa   : > { %2953 = vmatprep.subr.bf16.mxu0 %v2993_v39 }
 0x3fd   : > { %2955 = vmatpush3.bf16.msra.mxu0 %v2954_v41 }
 0x3fe   : > { %2956 = vmatprep.subr.bf16.mxu0 %v2993_v39 }
 0x401   : > { %2958 = vmatpush3.bf16.msra.mxu0 %v2957_v44 }
 0x404   : > { %2657 = vmatmul.mubr.f32.vlgmr.msra.gmra.mrb[8].mxu0 %v1777_v27 }
 0x4d7   : > { %v1864_v45 = vpop.f32.mrb[8].mxu0 }
 0x4d8   : > { %v2959_v46 = vadd.f32 %v1864_v45, %v1469_v17  ;;  %v2658_v47 = vpop.f32.mrb[9].mxu0 }
 0x4da   : > { %1869 = vst.msk [vmem:[%s419_s19] sm:$0xff] %vm446_vm0, %v2959_v46 }
 0x4db PF: > { %s23_s21 = sadd.s32 1, %s2990_s21  }
 0x4dc   : > { %p20_p4 = scmp.ge.s32.totalorder %s23_s21, 4  }
 0x4de   :  { %22 = sbr.rel (!%p20_p4) target bundleno = 1 (0x1), region = 116 }

</bundles_post_ra>
